<compile_context>
chip_gen: v7x
topology: tpu7x:2x2x1
jax: 0.10.0
libtpu: 0.0.40
codegen_flags: <defaults>
</compile_context>

<pallas_src>
import functools

import jax
import jax.numpy as jnp
from jax.experimental import pallas as pl
from jax.experimental.pallas import tpu as pltpu

# NT dot_general dims: contract the LAST dim of both operands (A @ B^T on the
# MXU, no materialized transpose) — same pattern as flash-attention q @ k^T.
_NT_DIMS = (((1,), (1,)), ((), ()))


def _network_kernel(x_ref, wc_ref, ones_ref, wf_ref, bf_ref,
                    logits_ref, feat_ref, acc_ref, *, inv_hw):
    # x_ref:      (1, C+1, tile_hw)  image slab (ones channel appended), HW lane-dense
    # wc_ref:     (F, C+1)           1x1-conv weight with bias folded as last column
    # ones_ref:   (1, tile_hw) f32   resident ones row for the MXU GAP reduction
    # wf_ref:     (F, K)             fc weight, pre-transposed (fc_w.T)
    # bf_ref:     (1, K)             fc bias row
    # logits_ref: (1, 1, K)          per-image logits (lane-dense)
    # feat_ref:   (1, 1, F)          per-image feature (lane-dense)
    # acc_ref:    VMEM (1, F) f32    pooled-sum accumulator (persists over j)
    #
    # NOTE: the accumulator protocol requires grid axis 1 (HW tiles) to be the
    # innermost/minor axis so all j run consecutively per image n.  That is the
    # default Pallas iteration order; do not reorder the grid axes.
    j = pl.program_id(1)

    @pl.when(j == 0)
    def _init():
        acc_ref[...] = jnp.zeros_like(acc_ref)

    # ---- synthetic extractor: 1x1 conv (+bias via augmented channel) + ReLU.
    # (With C ~ 4 the MXU is ~3% utilized — it has huge slack, which is why the
    #  bias fold and GAP reduce below are essentially free on it.)
    x = x_ref[0]                                                 # (C+1, tile_hw)
    h = jnp.dot(wc_ref[...], x, preferred_element_type=jnp.float32)
    h = jnp.maximum(h, 0.0)                                      # (F, tile_hw) f32

    # ---- partial global-average-pool on the MXU (keeps the XLU out of the
    # hot loop):  (1, tile_hw) @ (F, tile_hw)^T  ->  (1, F), f32 accumulate.
    acc_ref[...] += jax.lax.dot_general(
        ones_ref[...], h, dimension_numbers=_NT_DIMS,
        preferred_element_type=jnp.float32)

    # ---- finalize: divide by HW, fc head, lane-dense output stores ----
    @pl.when(j == pl.num_programs(1) - 1)
    def _finalize():
        feat_row = acc_ref[...] * inv_hw                         # (1, F) lane-dense
        feat_ref[...] = feat_row[None].astype(feat_ref.dtype)    # (1, 1, F)
        logits_row = jnp.dot(feat_row, wf_ref[...],
                             preferred_element_type=jnp.float32) + bf_ref[...]
        logits_ref[...] = logits_row[None].astype(logits_ref.dtype)


def _pick_tile_hw(hw, cap):
    """Largest HW tile <= cap dividing HW; prefers lane-aligned (128-mult) tiles."""
    if hw <= cap:
        return hw
    t = (cap // 128) * 128
    while t >= 128:
        if hw % t == 0:
            return t
        t -= 128
    # No lane-aligned divisor <= cap: accept any reasonable divisor, otherwise
    # refuse explicitly instead of silently picking a huge tile that can blow
    # the VMEM limit (caller should pad H*W or pass tile_hw).
    for t in range(cap, 7, -1):
        if hw % t == 0:
            return t
    raise ValueError(
        f"H*W={hw} has no usable divisor <= {cap}; pad the spatial dims or "
        f"pass tile_hw explicitly.")


def network_forward(x_nchw, conv_w, conv_b, fc_w, fc_b, *,
                    tile_hw=None, tile_hw_cap=4096, compute_dtype=None,
                    vmem_limit_bytes=48 * 1024 * 1024):
    """x_nchw: (N, C, H, W); conv_w: (C, F); conv_b: (F,);
    fc_w: (numclass, F) [PyTorch nn.Linear layout]; fc_b: (numclass,).

    tile_hw_cap=4096 keeps the f32 h temporary (F x tile_hw = 8 MiB) safe on
    v7x's 64 MiB VMEM; on v5e/v6e (128 MiB) it can be raised to 8192, and with
    compute_dtype=jnp.bfloat16 further still.
    """
    N, C, H, W = x_nchw.shape
    F = conv_w.shape[1]
    K = fc_w.shape[0]
    HW = H * W

    if tile_hw is None:
        tile_hw = _pick_tile_hw(HW, tile_hw_cap)
    assert HW % tile_hw == 0, "tile_hw must divide H*W"
    n_hw_tiles = HW // tile_hw

    # NCHW -> (N, C, HW): pure reshape (no HBM transpose pass).  Append a ones
    # channel so the conv bias rides the MXU matmul instead of costing a VPU
    # add + lane-broadcast every hot-loop tile.
    x3d = x_nchw.reshape(N, C, HW)
    x_aug = jnp.concatenate([x3d, jnp.ones((N, 1, HW), x3d.dtype)], axis=1)
    wc_aug = jnp.concatenate([conv_w.T, conv_b.reshape(F, 1)], axis=1)  # (F, C+1)

    if compute_dtype is not None:     # e.g. jnp.bfloat16 on v6e / v7x
        x_aug = x_aug.astype(compute_dtype)
        wc_aug = wc_aug.astype(compute_dtype)

    ones_row = jnp.ones((1, tile_hw), jnp.float32)   # resident MXU-GAP operand
    wf_t = fc_w.T.astype(jnp.float32)                # (F, K)
    bf_row = fc_b.reshape(1, K).astype(jnp.float32)  # (1, K)

    kernel = functools.partial(_network_kernel, inv_hw=1.0 / HW)

    logits3, feat3 = pl.pallas_call(
        kernel,
        out_shape=(jax.ShapeDtypeStruct((N, 1, K), jnp.float32),
                   jax.ShapeDtypeStruct((N, 1, F), jnp.float32)),
        grid=(N, n_hw_tiles),
        in_specs=[
            pl.BlockSpec((1, C + 1, tile_hw), lambda n, j: (n, 0, j)),
            # Weights / constants: constant index maps -> resident across grid.
            pl.BlockSpec((F, C + 1), lambda n, j: (0, 0)),
            pl.BlockSpec((1, tile_hw), lambda n, j: (0, 0)),
            pl.BlockSpec((F, K), lambda n, j: (0, 0)),
            pl.BlockSpec((1, K), lambda n, j: (0, 0)),
        ],
        out_specs=(
            pl.BlockSpec((1, 1, K), lambda n, j: (n, 0, 0)),
            pl.BlockSpec((1, 1, F), lambda n, j: (n, 0, 0)),
        ),
        scratch_shapes=[pltpu.VMEM((1, F), jnp.float32)],
        compiler_params=pltpu.CompilerParams(
            dimension_semantics=("parallel", "arbitrary"),
            vmem_limit_bytes=vmem_limit_bytes),
    )(x_aug, wc_aug, ones_row, wf_t, bf_row)

    logits = logits3.reshape(N, K)
    feat = feat3.reshape(N, F)
    return logits, feat


def network_forward_ref(x_nchw, conv_w, conv_b, fc_w, fc_b):
    """Pure-JAX reference with identical semantics."""
    N, C, H, W = x_nchw.shape
    x = jnp.transpose(x_nchw, (0, 2, 3, 1)).reshape(N, H * W, C)
    h = jnp.maximum(jnp.einsum('nhc,cf->nhf', x, conv_w) + conv_b, 0.0)
    feat = jnp.mean(h, axis=1)                       # (N, 512)
    logits = feat @ fc_w.T + fc_b                    # (N, numclass)
    return logits, feat


if __name__ == "__main__":
    # TODO(synk): the real `feature_extractor` module is external/unspecified;
    # a synthetic 1x1-conv + ReLU + GAP extractor stands in for it here.
    N, C, H, W = 2, 4, 16, 16      # small NCHW input
    FEAT = 512                     # fc input dim fixed by nn.Linear(512, numclass)
    NUMCLASS = 10

    key = jax.random.PRNGKey(0)
    kx, kcw, kcb, kfw, kfb = jax.random.split(key, 5)

    x = jax.random.normal(kx, (N, C, H, W), dtype=jnp.float32)
    conv_w = jax.random.normal(kcw, (C, FEAT), dtype=jnp.float32) * 0.1
    conv_b = jax.random.normal(kcb, (FEAT,), dtype=jnp.float32) * 0.1
    fc_w = jax.random.normal(kfw, (NUMCLASS, FEAT), dtype=jnp.float32) * 0.05
    fc_b = jax.random.normal(kfb, (NUMCLASS,), dtype=jnp.float32) * 0.05

    # tile_hw=128 so the demo exercises multi-tile pooled-sum accumulation
    # (H*W = 256 -> 2 spatial tiles per image).
    logits, feat = jax.block_until_ready(
        network_forward(x, conv_w, conv_b, fc_w, fc_b, tile_hw=128))
    logits_ref, feat_ref = network_forward_ref(x, conv_w, conv_b, fc_w, fc_b)

    assert logits.shape == (N, NUMCLASS) and feat.shape == (N, FEAT)
    assert jnp.allclose(logits, logits_ref, atol=1e-4, rtol=1e-4)
    assert jnp.allclose(feat, feat_ref, atol=1e-4, rtol=1e-4)
    print("KERNEL_OK")
</pallas_src>

<mosaic_0001>
module attributes {stable_mosaic.version = 11 : i64} {
  func.func @_network_kernel(%arg0: i32, %arg1: i32, %arg2: memref<1x5x128xf32, #tpu.memory_space<vmem>>, %arg3: memref<512x5xf32, #tpu.memory_space<vmem>>, %arg4: memref<1x128xf32, #tpu.memory_space<vmem>>, %arg5: memref<512x10xf32, #tpu.memory_space<vmem>>, %arg6: memref<1x10xf32, #tpu.memory_space<vmem>>, %arg7: memref<1x1x10xf32, #tpu.memory_space<vmem>>, %arg8: memref<1x1x512xf32, #tpu.memory_space<vmem>>, %arg9: memref<1x512xf32, #tpu.memory_space<vmem>>) attributes {dimension_semantics = [#tpu.dimension_semantics<parallel>, #tpu.dimension_semantics<arbitrary>], iteration_bounds = array<i64: 2, 2>, scalar_prefetch = 0 : i64, scratch_operands = 1 : i64, tpu.core_type = #tpu.core_type<tc>, window_params = [{transform_indices = @transform_0, window_bounds = array<i64: 1, 5, 128>}, {pipeline_mode = #tpu.pipeline_mode<synchronous>, transform_indices = @transform_1, window_bounds = array<i64: 512, 5>}, {pipeline_mode = #tpu.pipeline_mode<synchronous>, transform_indices = @transform_2, window_bounds = array<i64: 1, 128>}, {pipeline_mode = #tpu.pipeline_mode<synchronous>, transform_indices = @transform_3, window_bounds = array<i64: 512, 10>}, {pipeline_mode = #tpu.pipeline_mode<synchronous>, transform_indices = @transform_4, window_bounds = array<i64: 1, 10>}, {transform_indices = @transform_5, window_bounds = array<i64: 1, 1, 10>}, {transform_indices = @transform_6, window_bounds = array<i64: 1, 1, 512>}]} {
    %c0_i32 = arith.constant 0 : i32
    %0 = arith.cmpi eq, %arg1, %c0_i32 : i32
    %1 = arith.extui %0 : i1 to i32
    %c0_i32_0 = arith.constant 0 : i32
    %2 = arith.cmpi ne, %1, %c0_i32_0 : i32
    scf.if %2 {
      %cst_14 = arith.constant 0.000000e+00 : f32
      %17 = vector.broadcast %cst_14 : f32 to vector<1x512xf32>
      %c0_15 = arith.constant 0 : index
      %c0_16 = arith.constant 0 : index
      %18 = vector.load %arg9[%c0_15, %c0_16] : memref<1x512xf32, #tpu.memory_space<vmem>>, vector<1x512xf32>
      tpu.vector_store %arg9[%c0_15, %c0_16], %17 {strides = array<i32>} : memref<1x512xf32, #tpu.memory_space<vmem>>, vector<1x512xf32>,
    } else {
    }
    %c0 = arith.constant 0 : index
    %c0_1 = arith.constant 0 : index
    %c0_2 = arith.constant 0 : index
    %3 = vector.load %arg2[%c0, %c0_1, %c0_2] : memref<1x5x128xf32, #tpu.memory_space<vmem>>, vector<1x5x128xf32>
    %4 = vector.shape_cast %3 : vector<1x5x128xf32> to vector<5x128xf32>
    %c0_3 = arith.constant 0 : index
    %c0_4 = arith.constant 0 : index
    %5 = vector.load %arg3[%c0_3, %c0_4] : memref<512x5xf32, #tpu.memory_space<vmem>>, vector<512x5xf32>
    %cst = arith.constant dense<0.000000e+00> : vector<512x128xf32>
    %6 = tpu.matmul %5, %4, %cst {dimension_numbers = #tpu.dot_dimension_numbers<[1], [0], [0], [1], [0, 0, 1, 1], [], []>} : vector<512x5xf32>, vector<5x128xf32>, vector<512x128xf32> -> vector<512x128xf32>
    %cst_5 = arith.constant 0.000000e+00 : f32
    %7 = vector.broadcast %cst_5 : f32 to vector<512x128xf32>
    %8 = arith.maximumf %6, %7 : vector<512x128xf32>
    %c0_6 = arith.constant 0 : index
    %c0_7 = arith.constant 0 : index
    %9 = vector.load %arg9[%c0_6, %c0_7] : memref<1x512xf32, #tpu.memory_space<vmem>>, vector<1x512xf32>
    %c0_8 = arith.constant 0 : index
    %c0_9 = arith.constant 0 : index
    %10 = vector.load %arg4[%c0_8, %c0_9] : memref<1x128xf32, #tpu.memory_space<vmem>>, vector<1x128xf32>
    %cst_10 = arith.constant dense<0.000000e+00> : vector<1x512xf32>
    %11 = tpu.matmul %10, %8, %cst_10 {dimension_numbers = #tpu.dot_dimension_numbers<[1], [1], [0], [0], [0, 0, 1, 0], [], []>} : vector<1x128xf32>, vector<512x128xf32>, vector<1x512xf32> -> vector<1x512xf32>
    %12 = arith.addf %9, %11 : vector<1x512xf32>
    %c0_11 = arith.constant 0 : index
    %c0_12 = arith.constant 0 : index
    %13 = vector.load %arg9[%c0_11, %c0_12] : memref<1x512xf32, #tpu.memory_space<vmem>>, vector<1x512xf32>
    tpu.vector_store %arg9[%c0_11, %c0_12], %12 {strides = array<i32>} : memref<1x512xf32, #tpu.memory_space<vmem>>, vector<1x512xf32>,
    %c1_i32 = arith.constant 1 : i32
    %14 = arith.cmpi eq, %arg1, %c1_i32 : i32
    %15 = arith.extui %14 : i1 to i32
    %c0_i32_13 = arith.constant 0 : i32
    %16 = arith.cmpi ne, %15, %c0_i32_13 : i32
    scf.if %16 {
      %c0_14 = arith.constant 0 : index
      %c0_15 = arith.constant 0 : index
      %17 = vector.load %arg9[%c0_14, %c0_15] : memref<1x512xf32, #tpu.memory_space<vmem>>, vector<1x512xf32>
      %cst_16 = arith.constant 3.906250e-03 : f32
      %18 = vector.broadcast %cst_16 : f32 to vector<1x512xf32>
      %19 = arith.mulf %17, %18 : vector<1x512xf32>
      %20 = vector.shape_cast %19 : vector<1x512xf32> to vector<1x1x512xf32>
      %c0_17 = arith.constant 0 : index
      %c0_18 = arith.constant 0 : index
      %c0_19 = arith.constant 0 : index
      %21 = vector.load %arg8[%c0_17, %c0_18, %c0_19] : memref<1x1x512xf32, #tpu.memory_space<vmem>>, vector<1x1x512xf32>
      tpu.vector_store %arg8[%c0_17, %c0_18, %c0_19], %20 {strides = array<i32>} : memref<1x1x512xf32, #tpu.memory_space<vmem>>, vector<1x1x512xf32>,
      %c0_20 = arith.constant 0 : index
      %c0_21 = arith.constant 0 : index
      %22 = vector.load %arg5[%c0_20, %c0_21] : memref<512x10xf32, #tpu.memory_space<vmem>>, vector<512x10xf32>
      %cst_22 = arith.constant dense<0.000000e+00> : vector<1x10xf32>
      %23 = tpu.matmul %19, %22, %cst_22 {dimension_numbers = #tpu.dot_dimension_numbers<[1], [0], [0], [1], [0, 0, 1, 1], [], []>} : vector<1x512xf32>, vector<512x10xf32>, vector<1x10xf32> -> vector<1x10xf32>
      %c0_23 = arith.constant 0 : index
      %c0_24 = arith.constant 0 : index
      %24 = vector.load %arg6[%c0_23, %c0_24] : memref<1x10xf32, #tpu.memory_space<vmem>>, vector<1x10xf32>
      %25 = arith.addf %23, %24 : vector<1x10xf32>
      %26 = vector.shape_cast %25 : vector<1x10xf32> to vector<1x1x10xf32>
      %c0_25 = arith.constant 0 : index
      %c0_26 = arith.constant 0 : index
      %c0_27 = arith.constant 0 : index
      %27 = vector.load %arg7[%c0_25, %c0_26, %c0_27] : memref<1x1x10xf32, #tpu.memory_space<vmem>>, vector<1x1x10xf32>
      tpu.vector_store %arg7[%c0_25, %c0_26, %c0_27], %26 {strides = array<i32>} : memref<1x1x10xf32, #tpu.memory_space<vmem>>, vector<1x1x10xf32>,
    } else {
    }
    return
  }
  func.func @transform_0(%arg0: i32, %arg1: i32) -> (i32, i32, i32) {
    %c0_i32 = arith.constant 0 : i32
    %c0_i32_0 = arith.constant 0 : i32
    return %arg0, %c0_i32, %arg1 : i32, i32, i32
  }
  func.func @transform_1(%arg0: i32, %arg1: i32) -> (i32, i32) {
    %c0_i32 = arith.constant 0 : i32
    %c0_i32_0 = arith.constant 0 : i32
    %c0_i32_1 = arith.constant 0 : i32
    return %c0_i32, %c0_i32_0 : i32, i32
  }
  func.func @transform_2(%arg0: i32, %arg1: i32) -> (i32, i32) {
    %c0_i32 = arith.constant 0 : i32
    %c0_i32_0 = arith.constant 0 : i32
    %c0_i32_1 = arith.constant 0 : i32
    return %c0_i32, %c0_i32_0 : i32, i32
  }
  func.func @transform_3(%arg0: i32, %arg1: i32) -> (i32, i32) {
    %c0_i32 = arith.constant 0 : i32
    %c0_i32_0 = arith.constant 0 : i32
    %c0_i32_1 = arith.constant 0 : i32
    return %c0_i32, %c0_i32_0 : i32, i32
  }
  func.func @transform_4(%arg0: i32, %arg1: i32) -> (i32, i32) {
    %c0_i32 = arith.constant 0 : i32
    %c0_i32_0 = arith.constant 0 : i32
    %c0_i32_1 = arith.constant 0 : i32
    return %c0_i32, %c0_i32_0 : i32, i32
  }
  func.func @transform_5(%arg0: i32, %arg1: i32) -> (i32, i32, i32) {
    %c0_i32 = arith.constant 0 : i32
    %c0_i32_0 = arith.constant 0 : i32
    %c0_i32_1 = arith.constant 0 : i32
    return %arg0, %c0_i32, %c0_i32_0 : i32, i32, i32
  }
  func.func @transform_6(%arg0: i32, %arg1: i32) -> (i32, i32, i32) {
    %c0_i32 = arith.constant 0 : i32
    %c0_i32_0 = arith.constant 0 : i32
    %c0_i32_1 = arith.constant 0 : i32
    return %arg0, %c0_i32, %c0_i32_0 : i32, i32, i32
  }
}

</mosaic_0001>

<bundles_post_ra>
// kernel: tpu_custom_call.1
= control target key start
LH: loop header
LB: loop body
LE: loop exit
PB: predicated region body
PF: predicated region fallthrough
CT: control target
= control target key end

     0   :  { %s2978_s0 = inlined_call_operand.vmem [shape: f32[2,5,256], index: 0, kind: input, shape index: {}]   ;;  %s2979_s1 = inlined_call_operand.vmem [shape: f32[512,5], index: 1, kind: input, shape index: {}]   ;;  %s2980_s2 = inlined_call_operand.vmem [shape: f32[1,128], index: 2, kind: input, shape index: {}]   ;;  %s2981_s3 = inlined_call_operand.vmem [shape: f32[512,10], index: 3, kind: input, shape index: {}]   ;;  %s2982_s4 = inlined_call_operand.vmem [shape: f32[1,10], index: 4, kind: input, shape index: {}]   ;;  %s2983_s5 = inlined_call_operand.hbm [shape: f32[2,1,10], index: 5, kind: output, shape index: {0}]   ;;  %s2984_s6 = inlined_call_operand.hbm [shape: f32[2,1,512], index: 6, kind: output, shape index: {1}]  }
   0x1   :  { %2986 = sst [smem:[#allocation10_spill]] %s2978_s0 }
   0x2   :  { %2987 = sst [smem:[#allocation11_spill]] %s2979_s1 }
   0x3   :  { %12 = vsyncpa [#allocation4], 0 }
   0x4   :  { %14 = vsyncpa [#allocation4 + $0x1], 0 }
   0x5   :  { %15 = vsyncpa [#allocation6], 0 }
   0x6   :  { %17 = vsyncpa [#allocation6 + $0x1], 0  ;;  %s2309_s21 = smov 0   ;;  %s2311_s22 = smov 0  }
   0x7   :  { %s2313_s23 = smov 0   ;;  %s2315_s24 = smov 0  }
   0x8   :  { %s2317_s25 = smov 0   ;;  %s2319_s26 = smov 0  }
   0x9   :  { %s2321_s27 = smov 0   ;;  %s2323_s28 = smov 0  }
   0xa LB: > { %s1553_s29 = sadd.s32 4294967295, %s2268_s28   ;;  %s1554_s30 = sadd.s32 4294967294, %s2268_s28   ;;  %s2268_s28 = sphi %s2323_s28, %s23_s28   ;;  %s2264_s27 = sphi %s2321_s27, %s3004_s27   ;;  %s2260_s26 = sphi %s2319_s26, %s3003_s26   ;;  %s2256_s25 = sphi %s2317_s25, %s3002_s25   ;;  %s2252_s24 = sphi %s2315_s24, %s3001_s24   ;;  %s2248_s23 = sphi %s2313_s23, %s3000_s23   ;;  %s2244_s22 = sphi %s2311_s22, %s2999_s22   ;;  %s2240_s21 = sphi %s2309_s21, %s2998_s21  }
   0xb   : > { %s32_s7 = sadd.s32 1, %s2260_s26  ;;  %s35_s8 = sadd.s32 1, %s2264_s27 }
   0xc   : > { %p33_p0 = scmp.ge.s32.totalorder %s32_s7, 2  ;;  %p164_p1 = scmp.ne.s32.totalorder %s2248_s23, %s2244_s22 }
   0xd   : > { %p165_p2 = scmp.eq.s32.totalorder %s1553_s29, 3  ;;  %p170_p4 = scmp.ne.s32.totalorder %s2244_s22, %s2240_s21 }
   0xe   : > { %s3006_s7 = smov (%p33_p0, %s32_s7), 0  ;;  %s3008_s8 = smov (!%p33_p0, %s35_s8), %s2264_s27 }
   0xf   : > { %p2358_p3 = por %p165_p2, %p164_p1  ;;  %p37_p5 = scmp.ge.s32.totalorder %s3008_s8, 2 }
  0x10   : > { %p171_p6 = scmp.eq.s32.totalorder %s1554_s30, 3  ;;  %p1557_p7 = scmp.ge.s32.totalorder %s2268_s28, 1 }
  0x11   : > { %p238_p8 = scmp.lt.s32.totalorder %s2268_s28, 5  ;;  %s3010_s8 = smov (%p37_p5, %s3008_s8), 0 }
  0x12   : > { %2989 = sst [smem:[#allocation9_spill]] %s3010_s8  ;;  %p2368_p9 = por %p171_p6, %p170_p4 }
  0x13   : > { %p239_p10 = pnand %p1557_p7, %p238_p8  ;;  %s151_s11 = ssub.s32 %s2264_s27, %s3010_s8 }
  0x14   : > { %s154_s12 = sadd.s32 1, %s2248_s23  ;;  %p152_p11 = scmp.eq.s32.totalorder %s151_s11, 0 }
  0x15   : > { %242 = sbr.rel (%p239_p10) target bundleno = 928 (0x3a0), region = 40  ;;  %s2379_s14 = sand.u32 (!%p239_p10), 1, %s2244_s22  }
  0x16   : > { %s2376_s13 = scalar_select %p152_p11, %s2248_s23, %s154_s12  }
  0x17   : > { %p275_p12 = scmp.lt.s32.totalorder (!%p239_p10), %s2256_s25, 1  ;;  %s1558_s15 = sshll.u32 (!%p239_p10), %s2379_s14, 2 }
  0x18   : > { %p277_p13 = scmp.lt.s32.totalorder (!%p239_p10), %s2252_s24, 1  ;;  %s2991_s0 = sld [smem:[#allocation10_spill]] (!%p239_p10) }
  0x19   : > { %s2390_s8 = scalar_lea.vmem (!%p239_p10), [#allocation5], %s1558_s15  ;;  %p1561_p0 = scmp.ne.s32.totalorder (!%p239_p10), %s2252_s24, 0 }
  0x1c   : > { %s276_s16 = scalar_select %p275_p12, %s2256_s25, 1 }
  0x1d   : > { %s278_s17 = scalar_select %p277_p13, %s2252_s24, 1 }
  0x1e   : > { %s1559_s18 = sshll.u32 %s276_s16, 1  ;;  %286 = sbr.rel (%p1561_p0) target bundleno = 37 (0x25), region = 44  ;;  %v287_v0 = vlaneseq (!%p1561_p0)  ;;  %v2270_v1 = vmov (!%p1561_p0), 0.0  }
  0x1f   : > { %s280_s19 = sadd.s32 %s1559_s18, %s278_s17 }
  0x20   : > { %s1560_s20 = sshll.u32 %s280_s19, 3  ;;  %vm289_vm0 = vcmp.lt.s32.totalorder (!%p1561_p0), %v287_v0, 512 }
  0x21   : > { %s282_s11 = scalar_lea.vmem %s2991_s0, %s1560_s20  ;;  %291 = vst.msk [vmem:[#allocation2] sm:$0xf] (!%p1561_p0), %vm289_vm0, %v2270_v1 }
  0x25 PF: > { %v292_v2 = vld [vmem:[%s282_s11] sm:$0x1f]  ;;  %vm550_vm1 = vcmask 1044480   ;;  %s2992_s1 = sld [smem:[#allocation11_spill]]  ;;  %vm357_vm2 = vcmask 39936   ;;  %p1627_p1 = scmp.ne.s32.totalorder %s2252_s24, 1 }
  0x26   : > { %1838 = vmatprep.subr.msk.mxu0 %vm550_vm1, %v292_v2  ;;  %vm1415_vm4 = vcmask (!%p1627_p1), 73728   ;;  %s2995_s12 = scalar_lea.vmem (!%p1627_p1), [#allocation3], %s2379_s14 }
  0x27   : > { %1839 = vmatpush3.msk.msra.mxu0 %vm550_vm1, %v292_v2 }
  0x2b   : > { %v293_v3 = vld [vmem:[%s2992_s1] sm:$0xff]  ;;  %v294_v4 = vld [vmem:[%s2992_s1 + $0x8] sm:$0xff]  ;;  %v295_v5 = vld [vmem:[%s2992_s1 + $0x10] sm:$0xff] }
  0x2c   : > { %1840 = vmatprep.mubr.msk.f32.mxu0 %vm357_vm2, %v293_v3  ;;  %v296_v6 = vld [vmem:[%s2992_s1 + $0x18] sm:$0xff]  ;;  %v297_v7 = vld [vmem:[%s2992_s1 + $0x20] sm:$0xff]  ;;  %v298_v8 = vld [vmem:[%s2992_s1 + $0x28] sm:$0xff] }
  0x2d   : > { %1841 = vmatmul.mubr.msk.f32.vlgmr.msra.gmra.mrb[0].mxu0 %vm357_vm2, %v294_v4  ;;  %v299_v9 = vld [vmem:[%s2992_s1 + $0x30] sm:$0xff]  ;;  %v300_v10 = vld [vmem:[%s2992_s1 + $0x38] sm:$0xff]  ;;  %v301_v11 = vld [vmem:[%s2992_s1 + $0x40] sm:$0xff] }
  0x2e   : > { %1843 = vmatprep.mubr.msk.f32.mxu0 %vm357_vm2, %v295_v5  ;;  %v302_v12 = vld [vmem:[%s2992_s1 + $0x48] sm:$0xff]  ;;  %v303_v13 = vld [vmem:[%s2992_s1 + $0x50] sm:$0xff]  ;;  %v304_v14 = vld [vmem:[%s2992_s1 + $0x58] sm:$0xff] }
  0x2f   : > { %v305_v15 = vld [vmem:[%s2992_s1 + $0x60] sm:$0xff]  ;;  %v306_v16 = vld [vmem:[%s2992_s1 + $0x68] sm:$0xff]  ;;  %v307_v17 = vld [vmem:[%s2992_s1 + $0x70] sm:$0xff] }
  0x30   : > { %v308_v18 = vld [vmem:[%s2992_s1 + $0x78] sm:$0xff]  ;;  %v309_v19 = vld [vmem:[%s2992_s1 + $0x80] sm:$0xff]  ;;  %v310_v20 = vld [vmem:[%s2992_s1 + $0x88] sm:$0xff] }
  0x31   : > { %1844 = vmatmul.mubr.msk.f32.gmra.mrb[2].mxu0 %vm357_vm2, %v296_v6  ;;  %v311_v21 = vld [vmem:[%s2992_s1 + $0x90] sm:$0xff]  ;;  %v312_v22 = vld [vmem:[%s2992_s1 + $0x98] sm:$0xff]  ;;  %v313_v23 = vld [vmem:[%s2992_s1 + $0xa0] sm:$0xff] }
  0x32   : > { %1846 = vmatprep.mubr.msk.f32.mxu0 %vm357_vm2, %v297_v7  ;;  %v314_v24 = vld [vmem:[%s2992_s1 + $0xa8] sm:$0xff]  ;;  %v315_v25 = vld [vmem:[%s2992_s1 + $0xb0] sm:$0xff]  ;;  %v316_v26 = vld [vmem:[%s2992_s1 + $0xb8] sm:$0xff] }
  0x33   : > { %v317_v27 = vld [vmem:[%s2992_s1 + $0xc0] sm:$0xff]  ;;  %v318_v28 = vld [vmem:[%s2992_s1 + $0xc8] sm:$0xff]  ;;  %v319_v29 = vld [vmem:[%s2992_s1 + $0xd0] sm:$0xff] }
  0x34   : > { %v320_v30 = vld [vmem:[%s2992_s1 + $0xd8] sm:$0xff]  ;;  %v321_v31 = vld [vmem:[%s2992_s1 + $0xe0] sm:$0xff]  ;;  %v322_v32 = vld [vmem:[%s2992_s1 + $0xe8] sm:$0xff] }
  0x35   : > { %1847 = vmatmul.mubr.msk.f32.gmra.mrb[4].mxu0 %vm357_vm2, %v298_v8  ;;  %v323_v33 = vld [vmem:[%s2992_s1 + $0xf0] sm:$0xff]  ;;  %v324_v34 = vld [vmem:[%s2992_s1 + $0xf8] sm:$0xff]  ;;  %v325_v35 = vld [vmem:[%s2992_s1 + $0x100] sm:$0xff] }
  0x36   : > { %1849 = vmatprep.mubr.msk.f32.mxu0 %vm357_vm2, %v299_v9  ;;  %v326_v36 = vld [vmem:[%s2992_s1 + $0x108] sm:$0xff]  ;;  %v327_v37 = vld [vmem:[%s2992_s1 + $0x110] sm:$0xff]  ;;  %v328_v38 = vld [vmem:[%s2992_s1 + $0x118] sm:$0xff] }
  0x37   : > { %v329_v39 = vld [vmem:[%s2992_s1 + $0x120] sm:$0xff]  ;;  %v330_v40 = vld [vmem:[%s2992_s1 + $0x128] sm:$0xff]  ;;  %v331_v41 = vld [vmem:[%s2992_s1 + $0x130] sm:$0xff] }
  0x38   : > { %v332_v42 = vld [vmem:[%s2992_s1 + $0x138] sm:$0xff]  ;;  %v333_v43 = vld [vmem:[%s2992_s1 + $0x140] sm:$0xff]  ;;  %v334_v44 = vld [vmem:[%s2992_s1 + $0x148] sm:$0xff] }
  0x39   : > { %1850 = vmatmul.mubr.msk.f32.gmra.mrb[6].mxu0 %vm357_vm2, %v300_v10  ;;  %v335_v45 = vld [vmem:[%s2992_s1 + $0x150] sm:$0xff]  ;;  %v336_v46 = vld [vmem:[%s2992_s1 + $0x158] sm:$0xff]  ;;  %v337_v47 = vld [vmem:[%s2992_s1 + $0x160] sm:$0xff] }
  0x3a   : > { %1852 = vmatprep.mubr.msk.f32.mxu0 %vm357_vm2, %v301_v11  ;;  %v338_v48 = vld [vmem:[%s2992_s1 + $0x168] sm:$0xff]  ;;  %v339_v49 = vld [vmem:[%s2992_s1 + $0x170] sm:$0xff]  ;;  %v340_v50 = vld [vmem:[%s2992_s1 + $0x178] sm:$0xff] }
  0x3b   : > { %v341_v51 = vld [vmem:[%s2992_s1 + $0x180] sm:$0xff]  ;;  %v342_v52 = vld [vmem:[%s2992_s1 + $0x188] sm:$0xff]  ;;  %v343_v53 = vld [vmem:[%s2992_s1 + $0x190] sm:$0xff] }
  0x3c   : > { %v344_v54 = vld [vmem:[%s2992_s1 + $0x198] sm:$0xff]  ;;  %v345_v55 = vld [vmem:[%s2992_s1 + $0x1a0] sm:$0xff]  ;;  %v346_v56 = vld [vmem:[%s2992_s1 + $0x1a8] sm:$0xff] }
  0x3d   : > { %1853 = vmatmul.mubr.msk.f32.gmra.mrb[8].mxu0 %vm357_vm2, %v302_v12  ;;  %v347_v57 = vld [vmem:[%s2992_s1 + $0x1b0] sm:$0xff]  ;;  %v348_v58 = vld [vmem:[%s2992_s1 + $0x1b8] sm:$0xff]  ;;  %v349_v59 = vld [vmem:[%s2992_s1 + $0x1c0] sm:$0xff] }
  0x3e   : > { %1855 = vmatprep.mubr.msk.f32.mxu0 %vm357_vm2, %v303_v13  ;;  %v350_v60 = vld [vmem:[%s2992_s1 + $0x1c8] sm:$0xff]  ;;  %v351_v61 = vld [vmem:[%s2992_s1 + $0x1d0] sm:$0xff]  ;;  %v352_v62 = vld [vmem:[%s2992_s1 + $0x1d8] sm:$0xff] }
  0x3f   : > { %v353_v63 = vld [vmem:[%s2992_s1 + $0x1e0] sm:$0xff]  ;;  %v354_v0 = vld [vmem:[%s2992_s1 + $0x1e8] sm:$0xff]  ;;  %v355_v1 = vld [vmem:[%s2992_s1 + $0x1f0] sm:$0xff] }
  0x40   : > { %v356_v2 = vld [vmem:[%s2992_s1 + $0x1f8] sm:$0xff]  ;;  %v2652_v3 = vld [vmem:[%s2980_s2] sm:$0x1] }
  0x41   : > { %1856 = vmatmul.mubr.msk.f32.gmra.mrb[10].mxu0 %vm357_vm2, %v304_v14  ;;  %1732 = vmatprep.mubr.f32.mxu1 %v2652_v3 }
  0x42   : > { %1858 = vmatprep.mubr.msk.f32.mxu0 %vm357_vm2, %v305_v15 }
  0x45   : > { %1859 = vmatmul.mubr.msk.f32.gmra.mrb[12].mxu0 %vm357_vm2, %v306_v16 }
  0x46   : > { %1861 = vmatprep.mubr.msk.f32.mxu0 %vm357_vm2, %v307_v17 }
  0x49   : > { %1862 = vmatmul.mubr.msk.f32.gmra.mrb[14].mxu0 %vm357_vm2, %v308_v18 }
  0x4a   : > { %1864 = vmatprep.mubr.msk.f32.mxu0 %vm357_vm2, %v309_v19 }
  0x4d   : > { %1865 = vmatmul.mubr.msk.f32.gmra.mrb[16].mxu0 %vm357_vm2, %v310_v20 }
  0x4e   : > { %1867 = vmatprep.mubr.msk.f32.mxu0 %vm357_vm2, %v311_v21 }
  0x51   : > { %1868 = vmatmul.mubr.msk.f32.gmra.mrb[18].mxu0 %vm357_vm2, %v312_v22 }
  0x52   : > { %1870 = vmatprep.mubr.msk.f32.mxu0 %vm357_vm2, %v313_v23 }
  0x55   : > { %1871 = vmatmul.mubr.msk.f32.gmra.mrb[20].mxu0 %vm357_vm2, %v314_v24 }
  0x56   : > { %1873 = vmatprep.mubr.msk.f32.mxu0 %vm357_vm2, %v315_v25 }
  0x59   : > { %1874 = vmatmul.mubr.msk.f32.gmra.mrb[22].mxu0 %vm357_vm2, %v316_v26 }
  0x5a   : > { %1876 = vmatprep.mubr.msk.f32.mxu0 %vm357_vm2, %v317_v27 }
  0x5d   : > { %1877 = vmatmul.mubr.msk.f32.gmra.mrb[24].mxu0 %vm357_vm2, %v318_v28 }
  0x5e   : > { %1879 = vmatprep.mubr.msk.f32.mxu0 %vm357_vm2, %v319_v29 }
  0x61   : > { %1880 = vmatmul.mubr.msk.f32.gmra.mrb[26].mxu0 %vm357_vm2, %v320_v30 }
  0x62   : > { %1882 = vmatprep.mubr.msk.f32.mxu0 %vm357_vm2, %v321_v31 }
  0x65   : > { %1883 = vmatmul.mubr.msk.f32.gmra.mrb[28].mxu0 %vm357_vm2, %v322_v32 }
  0x66   : > { %1885 = vmatprep.mubr.msk.f32.mxu0 %vm357_vm2, %v323_v33 }
  0x69   : > { %1886 = vmatmul.mubr.msk.f32.gmra.mrb[30].mxu0 %vm357_vm2, %v324_v34 }
  0x6a   : > { %1888 = vmatprep.mubr.msk.f32.mxu0 %vm357_vm2, %v325_v35 }
  0x6d   : > { %1889 = vmatmul.mubr.msk.f32.gmra.mrb[32].mxu0 %vm357_vm2, %v326_v36 }
  0x6e   : > { %1891 = vmatprep.mubr.msk.f32.mxu0 %vm357_vm2, %v327_v37 }
  0x71   : > { %1892 = vmatmul.mubr.msk.f32.gmra.mrb[34].mxu0 %vm357_vm2, %v328_v38 }
  0x72   : > { %1894 = vmatprep.mubr.msk.f32.mxu0 %vm357_vm2, %v329_v39 }
  0x75   : > { %1895 = vmatmul.mubr.msk.f32.gmra.mrb[36].mxu0 %vm357_vm2, %v330_v40 }
  0x76   : > { %1897 = vmatprep.mubr.msk.f32.mxu0 %vm357_vm2, %v331_v41 }
  0x79   : > { %1898 = vmatmul.mubr.msk.f32.gmra.mrb[38].mxu0 %vm357_vm2, %v332_v42 }
  0x7a   : > { %1900 = vmatprep.mubr.msk.f32.mxu0 %vm357_vm2, %v333_v43 }
  0x7d   : > { %1901 = vmatmul.mubr.msk.f32.gmra.mrb[40].mxu0 %vm357_vm2, %v334_v44 }
  0x7e   : > { %1903 = vmatprep.mubr.msk.f32.mxu0 %vm357_vm2, %v335_v45 }
  0x81   : > { %1904 = vmatmul.mubr.msk.f32.gmra.mrb[42].mxu0 %vm357_vm2, %v336_v46 }
  0x82   : > { %1906 = vmatprep.mubr.msk.f32.mxu0 %vm357_vm2, %v337_v47 }
  0x85   : > { %1907 = vmatmul.mubr.msk.f32.gmra.mrb[44].mxu0 %vm357_vm2, %v338_v48 }
  0x86   : > { %1909 = vmatprep.mubr.msk.f32.mxu0 %vm357_vm2, %v339_v49 }
  0x89   : > { %1910 = vmatmul.mubr.msk.f32.gmra.mrb[46].mxu0 %vm357_vm2, %v340_v50 }
  0x8a   : > { %1912 = vmatprep.mubr.msk.f32.mxu0 %vm357_vm2, %v341_v51 }
  0x8d   : > { %1913 = vmatmul.mubr.msk.f32.gmra.mrb[48].mxu0 %vm357_vm2, %v342_v52 }
  0x8e   : > { %1915 = vmatprep.mubr.msk.f32.mxu0 %vm357_vm2, %v343_v53 }
  0x91   : > { %1916 = vmatmul.mubr.msk.f32.gmra.mrb[50].mxu0 %vm357_vm2, %v344_v54 }
  0x92   : > { %1918 = vmatprep.mubr.msk.f32.mxu0 %vm357_vm2, %v345_v55 }
  0x95   : > { %1919 = vmatmul.mubr.msk.f32.gmra.mrb[52].mxu0 %vm357_vm2, %v346_v56 }
  0x96   : > { %1921 = vmatprep.mubr.msk.f32.mxu0 %vm357_vm2, %v347_v57 }
  0x99   : > { %1922 = vmatmul.mubr.msk.f32.gmra.mrb[54].mxu0 %vm357_vm2, %v348_v58 }
  0x9a   : > { %1924 = vmatprep.mubr.msk.f32.mxu0 %vm357_vm2, %v349_v59 }
  0x9d   : > { %1925 = vmatmul.mubr.msk.f32.gmra.mrb[56].mxu0 %vm357_vm2, %v350_v60 }
  0x9e   : > { %1927 = vmatprep.mubr.msk.f32.mxu0 %vm357_vm2, %v351_v61 }
  0xa1   : > { %1928 = vmatmul.mubr.msk.f32.gmra.mrb[58].mxu0 %vm357_vm2, %v352_v62 }
  0xa2   : > { %1930 = vmatprep.mubr.msk.f32.mxu0 %vm357_vm2, %v353_v63 }
  0xa5   : > { %1931 = vmatmul.mubr.msk.f32.gmra.mrb[60].mxu0 %vm357_vm2, %v354_v0 }
  0xa6   : > { %1933 = vmatprep.mubr.msk.f32.mxu0 %vm357_vm2, %v355_v1 }
  0xa9   : > { %1934 = vmatmul.mubr.msk.f32.gmra.mrb[62].mxu0 %vm357_vm2, %v356_v2 }
 0x100   : > { %v1842_v4 = vpop.f32.mrb[0].mxu0 }
 0x101   : > { %v940_v5 = vmax.f32 %v1842_v4, 0.0  ;;  %v620_v6 = vpop.f32.mrb[1].mxu0 }
 0x102   : > { %v939_v7 = vmax.f32 %v620_v6, 0.0 }
 0x104   : > { %v1845_v8 = vpop.f32.mrb[2].mxu0  ;;  %v1938_v9 = vpack.c.bf16 %v940_v5, %v939_v7 }
 0x105   : > { %v942_v10 = vmax.f32 %v1845_v8, 0.0  ;;  %v630_v11 = vpop.f32.mrb[3].mxu0 }
 0x106   : > { %v941_v12 = vmax.f32 %v630_v11, 0.0 }
 0x108   : > { %v1942_v13 = vpack.c.bf16 %v942_v10, %v941_v12  ;;  %v1848_v14 = vpop.f32.mrb[4].mxu0 }
 0x109   : > { %v944_v15 = vmax.f32 %v1848_v14, 0.0  ;;  %v640_v16 = vpop.f32.mrb[5].mxu0 }
 0x10a   : > { %v943_v17 = vmax.f32 %v640_v16, 0.0 }
 0x10c   : > { %v1946_v18 = vpack.c.bf16 %v944_v15, %v943_v17  ;;  %v1851_v19 = vpop.f32.mrb[6].mxu0 }
 0x10d   : > { %v946_v20 = vmax.f32 %v1851_v19, 0.0  ;;  %v650_v21 = vpop.f32.mrb[7].mxu0 }
 0x10e   : > { %v945_v22 = vmax.f32 %v650_v21, 0.0 }
 0x110   : > { %v2655_v23 = vpack.c.bf16 %v946_v20, %v945_v22  ;;  %v1854_v24 = vpop.f32.mrb[8].mxu0 }
 0x111   : > { %v948_v25 = vmax.f32 %v1854_v24, 0.0  ;;  %v660_v26 = vpop.f32.mrb[9].mxu0 }
 0x112   : > { %v947_v27 = vmax.f32 %v660_v26, 0.0 }
 0x114   : > { %v2657_v28 = vpack.c.bf16 %v948_v25, %v947_v27  ;;  %v1857_v29 = vpop.f32.mrb[10].mxu0 }
 0x115   : > { %v950_v30 = vmax.f32 %v1857_v29, 0.0  ;;  %v670_v31 = vpop.f32.mrb[11].mxu0 }
 0x116   : > { %v949_v32 = vmax.f32 %v670_v31, 0.0 }
 0x118   : > { %v2659_v33 = vpack.c.bf16 %v950_v30, %v949_v32  ;;  %v1860_v34 = vpop.f32.mrb[12].mxu0 }
 0x119   : > { %v952_v35 = vmax.f32 %v1860_v34, 0.0  ;;  %v680_v36 = vpop.f32.mrb[13].mxu0 }
 0x11a   : > { %v951_v37 = vmax.f32 %v680_v36, 0.0 }
 0x11c   : > { %v2661_v38 = vpack.c.bf16 %v952_v35, %v951_v37  ;;  %v1863_v39 = vpop.f32.mrb[14].mxu0 }
 0x11d   : > { %v954_v40 = vmax.f32 %v1863_v39, 0.0  ;;  %v690_v41 = vpop.f32.mrb[15].mxu0 }
 0x11e   : > { %v953_v42 = vmax.f32 %v690_v41, 0.0 }
 0x120   : > { %v2663_v43 = vpack.c.bf16 %v954_v40, %v953_v42  ;;  %v1866_v44 = vpop.f32.mrb[16].mxu0 }
 0x121   : > { %v956_v45 = vmax.f32 %v1866_v44, 0.0  ;;  %v700_v46 = vpop.f32.mrb[17].mxu0 }
 0x122   : > { %v955_v47 = vmax.f32 %v700_v46, 0.0 }
 0x124   : > { %v1869_v48 = vpop.f32.mrb[18].mxu0  ;;  %v1936_v49 = vpack.c.bf16 %v956_v45, %v955_v47 }
 0x125   : > { %v958_v50 = vmax.f32 %v1869_v48, 0.0  ;;  %v710_v51 = vpop.f32.mrb[19].mxu0 }
 0x126   : > { %v957_v52 = vmax.f32 %v710_v51, 0.0  ;;  %1937 = vmatprep.subr.bf16.mxu1 %v1936_v49 }
 0x127   : > { %1939 = vmatpush3.bf16.xpose.msra.mxu1 %v1938_v9 }
 0x128   : > { %v1940_v53 = vpack.c.bf16 %v958_v50, %v957_v52  ;;  %v1872_v54 = vpop.f32.mrb[20].mxu0 }
 0x129   : > { %v960_v55 = vmax.f32 %v1872_v54, 0.0  ;;  %v720_v56 = vpop.f32.mrb[21].mxu0 }
 0x12a   : > { %v959_v57 = vmax.f32 %v720_v56, 0.0  ;;  %1941 = vmatprep.subr.bf16.mxu1 %v1940_v53 }
 0x12c   : > { %v1944_v58 = vpack.c.bf16 %v960_v55, %v959_v57  ;;  %v1875_v59 = vpop.f32.mrb[22].mxu0 }
 0x12d   : > { %v962_v60 = vmax.f32 %v1875_v59, 0.0  ;;  %v730_v61 = vpop.f32.mrb[23].mxu0 }
 0x12e   : > { %v961_v62 = vmax.f32 %v730_v61, 0.0 }
 0x12f   : > { %1943 = vmatpush3.bf16.xpose.msra.mxu1 %v1942_v13 }
 0x130   : > { %v1948_v63 = vpack.c.bf16 %v962_v60, %v961_v62  ;;  %v1878_v0 = vpop.f32.mrb[24].mxu0  ;;  %1945 = vmatprep.subr.bf16.mxu1 %v1944_v58 }
 0x131   : > { %v964_v1 = vmax.f32 %v1878_v0, 0.0  ;;  %v740_v2 = vpop.f32.mrb[25].mxu0 }
 0x132   : > { %v963_v4 = vmax.f32 %v740_v2, 0.0 }
 0x134   : > { %v1952_v5 = vpack.c.bf16 %v964_v1, %v963_v4  ;;  %v1881_v6 = vpop.f32.mrb[26].mxu0 }
 0x135   : > { %v966_v7 = vmax.f32 %v1881_v6, 0.0  ;;  %v750_v8 = vpop.f32.mrb[27].mxu0 }
 0x136   : > { %v965_v9 = vmax.f32 %v750_v8, 0.0 }
 0x137   : > { %1947 = vmatpush3.bf16.xpose.msra.mxu1 %v1946_v18 }
 0x138   : > { %v1956_v10 = vpack.c.bf16 %v966_v7, %v965_v9  ;;  %v1884_v11 = vpop.f32.mrb[28].mxu0  ;;  %1949 = vmatprep.subr.bf16.mxu1 %v1948_v63 }
 0x139   : > { %v968_v12 = vmax.f32 %v1884_v11, 0.0  ;;  %v760_v14 = vpop.f32.mrb[29].mxu0 }
 0x13a   : > { %v967_v15 = vmax.f32 %v760_v14, 0.0 }
 0x13c   : > { %v1960_v16 = vpack.c.bf16 %v968_v12, %v967_v15  ;;  %v1887_v13 = vpop.f32.mrb[30].mxu0 }
 0x13d   : > { %v970_v17 = vmax.f32 %v1887_v13, 0.0  ;;  %v770_v19 = vpop.f32.mrb[31].mxu0 }
 0x13e   : > { %v969_v20 = vmax.f32 %v770_v19, 0.0 }
 0x13f   : > { %1951 = vmatpush3.bf16.xpose.msra.mxu1 %v2655_v23 }
 0x140   : > { %v1964_v21 = vpack.c.bf16 %v970_v17, %v969_v20  ;;  %v1890_v22 = vpop.f32.mrb[32].mxu0  ;;  %1953 = vmatprep.subr.bf16.mxu1 %v1952_v5 }
 0x141   : > { %v972_v24 = vmax.f32 %v1890_v22, 0.0  ;;  %v780_v25 = vpop.f32.mrb[33].mxu0 }
 0x142   : > { %v971_v26 = vmax.f32 %v780_v25, 0.0 }
 0x144   : > { %v1970_v18 = vpack.c.bf16 %v972_v24, %v971_v26  ;;  %v1893_v27 = vpop.f32.mrb[34].mxu0 }
 0x145   : > { %v974_v29 = vmax.f32 %v1893_v27, 0.0  ;;  %v790_v30 = vpop.f32.mrb[35].mxu0 }
 0x146   : > { %v973_v31 = vmax.f32 %v790_v30, 0.0 }
 0x147   : > { %1955 = vmatpush3.bf16.xpose.msra.mxu1 %v2657_v28 }
 0x148   : > { %v1974_v32 = vpack.c.bf16 %v974_v29, %v973_v31  ;;  %v1896_v34 = vpop.f32.mrb[36].mxu0  ;;  %1957 = vmatprep.subr.bf16.mxu1 %v1956_v10 }
 0x149   : > { %v976_v35 = vmax.f32 %v1896_v34, 0.0  ;;  %v800_v36 = vpop.f32.mrb[37].mxu0 }
 0x14a   : > { %v975_v37 = vmax.f32 %v800_v36, 0.0 }
 0x14c   : > { %v2667_v23 = vpack.c.bf16 %v976_v35, %v975_v37  ;;  %v1899_v39 = vpop.f32.mrb[38].mxu0 }
 0x14d   : > { %v978_v40 = vmax.f32 %v1899_v39, 0.0  ;;  %v810_v41 = vpop.f32.mrb[39].mxu0 }
 0x14e   : > { %v977_v42 = vmax.f32 %v810_v41, 0.0 }
 0x14f   : > { %1959 = vmatpush3.bf16.xpose.msra.mxu1 %v2659_v33 }
 0x150   : > { %v2670_v44 = vpack.c.bf16 %v978_v40, %v977_v42  ;;  %v1902_v45 = vpop.f32.mrb[40].mxu0  ;;  %1961 = vmatprep.subr.bf16.mxu1 %v1960_v16 }
 0x151   : > { %v980_v46 = vmax.f32 %v1902_v45, 0.0  ;;  %v820_v28 = vpop.f32.mrb[41].mxu0 }
 0x152   : > { %v979_v47 = vmax.f32 %v820_v28, 0.0 }
 0x154   : > { %v2672_v48 = vpack.c.bf16 %v980_v46, %v979_v47  ;;  %v1905_v49 = vpop.f32.mrb[42].mxu0  ;;  %v2271_v46 = vmov 1966171168   ;;  %v1156_v47 = vlaneseq }
 0x155   : > { %v982_v50 = vmax.f32 %v1905_v49, 0.0  ;;  %v830_v51 = vpop.f32.mrb[43].mxu0  ;;  %v1154_v28 = vunpack.c.l.s4 %v2271_v46 }
 0x156   : > { %v981_v52 = vmax.f32 %v830_v51, 0.0  ;;  %v2685_v49 = vshrl.u32 %v1156_v47, 7  ;;  %vm2688_vm3 = vcmp.lt.s32.totalorder %v1156_v47, 512  ;;  %v1246_v47 = vld [vmem:[%s2981_s3 + $0x1c8] sm:$0xff] (!%p1627_p1) }
 0x157   : > { %1963 = vmatpush3.bf16.xpose.msra.mxu1 %v2661_v38 }
 0x158   : > { %v2675_v53 = vpack.c.bf16 %v982_v50, %v981_v52  ;;  %v1908_v54 = vpop.f32.mrb[44].mxu0  ;;  %1965 = vmatprep.subr.bf16.mxu1 %v1964_v21 }
 0x159   : > { %v984_v33 = vmax.f32 %v1908_v54, 0.0  ;;  %v840_v55 = vpop.f32.mrb[45].mxu0 }
 0x15a   : > { %v983_v56 = vmax.f32 %v840_v55, 0.0  ;;  %v1003_v55 = vld [vmem:[#allocation2] sm:$0xf] }
 0x15c   : > { %v1994_v57 = vpack.c.bf16 %v984_v33, %v983_v56  ;;  %v1911_v58 = vpop.f32.mrb[46].mxu0 }
 0x15d   : > { %v986_v59 = vmax.f32 %v1911_v58, 0.0  ;;  %v850_v60 = vpop.f32.mrb[47].mxu0  ;;  %v1205_v58 = vld [vmem:[%s2981_s3 + $0x80] sm:$0xff] (!%p1627_p1) }
 0x15e   : > { %v985_v61 = vmax.f32 %v850_v60, 0.0  ;;  %v1189_v60 = vld [vmem:[%s2981_s3] sm:$0xff] (!%p1627_p1) }
 0x15f   : > { %1967 = vmatpush3.bf16.xpose.msra.mxu1 %v2663_v43 }
 0x160   : > { %v1998_v62 = vpack.c.bf16 %v986_v59, %v985_v61  ;;  %v1914_v63 = vpop.f32.mrb[48].mxu0  ;;  %v1206_v59 = vld [vmem:[%s2981_s3 + $0x88] sm:$0xff] (!%p1627_p1) }
 0x161   : > { %v988_v0 = vmax.f32 %v1914_v63, 0.0  ;;  %v860_v1 = vpop.f32.mrb[49].mxu0  ;;  %v2000_v61 = vpack.c.bf16 (!%p1627_p1), %v1206_v59, %v1205_v58  ;;  %v1237_v63 = vld [vmem:[%s2981_s3 + $0x180] sm:$0xff] (!%p1627_p1) }
 0x162   : > { %v987_v2 = vmax.f32 %v860_v1, 0.0 }
 0x163   : > { %2001 = vmatprep.subr.bf16.mxu0 (!%p1627_p1), %v2000_v61  ;;  %v1199_v61 = vld [vmem:[%s2981_s3 + $0x50] sm:$0xff] (!%p1627_p1) }
 0x164   : > { %v1968_v38 = vpack.c.bf16 %v988_v0, %v987_v2  ;;  %v1917_v4 = vpop.f32.mrb[50].mxu0  ;;  %v1238_v0 = vld [vmem:[%s2981_s3 + $0x188] sm:$0xff] (!%p1627_p1) }
 0x165   : > { %v990_v5 = vmax.f32 %v1917_v4, 0.0  ;;  %v870_v6 = vpop.f32.mrb[51].mxu0  ;;  %v2032_v2 = vpack.c.bf16 (!%p1627_p1), %v1238_v0, %v1237_v63  ;;  %v1222_v4 = vld [vmem:[%s2981_s3 + $0x108] sm:$0xff] (!%p1627_p1)  ;;  %v1231_v63 = vld [vmem:[%s2981_s3 + $0x150] sm:$0xff] (!%p1627_p1) }
 0x166   : > { %1733 = vmatmul.mubr.f32.vlgmr.msra.gmra.mrb[0].mxu1 %v2652_v3  ;;  %1969 = vmatprep.subr.bf16.mxu1 %v1968_v38  ;;  %v989_v7 = vmax.f32 %v870_v6, 0.0  ;;  %v1221_v38 = vld [vmem:[%s2981_s3 + $0x100] sm:$0xff] (!%p1627_p1) }
 0x167   : > { %1971 = vmatpush3.bf16.xpose.msra.mxu1 %v1970_v18  ;;  %1766 = vmatprep.mubr.f32.mxu1 %v2652_v3  ;;  %v2034_v6 = vpack.c.bf16 (!%p1627_p1), %v1222_v4, %v1221_v38  ;;  %v1218_v38 = vld [vmem:[%s2981_s3 + $0xe8] sm:$0xff] (!%p1627_p1)  ;;  %v1249_v4 = vld [vmem:[%s2981_s3 + $0x1e0] sm:$0xff] (!%p1627_p1) }
 0x168   : > { %v1972_v8 = vpack.c.bf16 %v990_v5, %v989_v7  ;;  %v1920_v9 = vpop.f32.mrb[52].mxu0  ;;  %v1207_v5 = vld [vmem:[%s2981_s3 + $0x90] sm:$0xff] (!%p1627_p1)  ;;  %v1208_v7 = vld [vmem:[%s2981_s3 + $0x98] sm:$0xff] (!%p1627_p1) }
 0x169   : > { %v992_v10 = vmax.f32 %v1920_v9, 0.0  ;;  %v880_v43 = vpop.f32.mrb[53].mxu0  ;;  %v1192_v9 = vld [vmem:[%s2981_s3 + $0x18] sm:$0xff] (!%p1627_p1) }
 0x16a   : > { %1973 = vmatprep.subr.bf16.mxu1 %v1972_v8  ;;  %v991_v11 = vmax.f32 %v880_v43, 0.0  ;;  %v1191_v8 = vld [vmem:[%s2981_s3 + $0x10] sm:$0xff] (!%p1627_p1) }
 0x16b   : > { %v2006_v43 = vpack.c.bf16 (!%p1627_p1), %v1192_v9, %v1191_v8  ;;  %v1261_v8 = vsub.s32 (!%p1627_p1), 1, %v2685_v49  ;;  %v1269_v9 = vsub.s32 (!%p1627_p1), 3, %v2685_v49 }
 0x16c   : > { %v1976_v12 = vpack.c.bf16 %v992_v10, %v991_v11  ;;  %v1923_v14 = vpop.f32.mrb[54].mxu0  ;;  %v2004_v10 = vpack.c.bf16 (!%p1627_p1), %v1208_v7, %v1207_v5  ;;  %v1239_v11 = vld [vmem:[%s2981_s3 + $0x190] sm:$0xff] (!%p1627_p1)  ;;  %v1250_v5 = vld [vmem:[%s2981_s3 + $0x1e8] sm:$0xff] (!%p1627_p1)  ;;  %v1201_v7 = vld [vmem:[%s2981_s3 + $0x60] sm:$0xff] (!%p1627_p1) }
 0x16d   : > { %v994_v15 = vmax.f32 %v1923_v14, 0.0  ;;  %v890_v16 = vpop.f32.mrb[55].mxu0  ;;  %v1223_v14 = vld [vmem:[%s2981_s3 + $0x110] sm:$0xff] (!%p1627_p1) }
 0x16e   : > { %v993_v13 = vmax.f32 %v890_v16, 0.0  ;;  %v1224_v16 = vld [vmem:[%s2981_s3 + $0x118] sm:$0xff] (!%p1627_p1) }
 0x16f   : > { %1975 = vmatpush3.bf16.xpose.msra.mxu1 %v1974_v32 }
 0x170   : > { %1977 = vmatprep.subr.bf16.mxu1 %v1976_v12  ;;  %v1980_v17 = vpack.c.bf16 %v994_v15, %v993_v13  ;;  %v1926_v19 = vpop.f32.mrb[56].mxu0  ;;  %v1240_v12 = vld [vmem:[%s2981_s3 + $0x198] sm:$0xff] (!%p1627_p1)  ;;  %v1209_v13 = vld [vmem:[%s2981_s3 + $0xa0] sm:$0xff] (!%p1627_p1) }
 0x171   : > { %v996_v20 = vmax.f32 %v1926_v19, 0.0  ;;  %v900_v21 = vpop.f32.mrb[57].mxu0  ;;  %v2036_v15 = vpack.c.bf16 (!%p1627_p1), %v1240_v12, %v1239_v11  ;;  %v2038_v19 = vpack.c.bf16 (!%p1627_p1), %v1224_v16, %v1223_v14  ;;  %v1202_v11 = vld [vmem:[%s2981_s3 + $0x68] sm:$0xff] (!%p1627_p1)  ;;  %v1233_v12 = vld [vmem:[%s2981_s3 + $0x160] sm:$0xff] (!%p1627_p1) }
 0x172   : > { %v995_v22 = vmax.f32 %v900_v21, 0.0  ;;  %v1193_v21 = vld [vmem:[%s2981_s3 + $0x20] sm:$0xff] (!%p1627_p1)  ;;  %v1234_v16 = vld [vmem:[%s2981_s3 + $0x168] sm:$0xff] (!%p1627_p1) }
 0x174   : > { %v1984_v24 = vpack.c.bf16 %v996_v20, %v995_v22  ;;  %v1929_v25 = vpop.f32.mrb[58].mxu0  ;;  %v1194_v22 = vld [vmem:[%s2981_s3 + $0x28] sm:$0xff] (!%p1627_p1) }
 0x175   : > { %v998_v26 = vmax.f32 %v1929_v25, 0.0  ;;  %v910_v18 = vpop.f32.mrb[59].mxu0  ;;  %v1242_v25 = vld [vmem:[%s2981_s3 + $0x1a8] sm:$0xff] (!%p1627_p1) }
 0x176   : > { %v997_v27 = vmax.f32 %v910_v18, 0.0  ;;  %v1226_v18 = vld [vmem:[%s2981_s3 + $0x128] sm:$0xff] (!%p1627_p1) }
 0x177   : > { %1979 = vmatpush3.bf16.xpose.msra.mxu1 %v2667_v23 }
 0x178   : > { %1981 = vmatprep.subr.bf16.mxu1 %v1980_v17  ;;  %v1988_v29 = vpack.c.bf16 %v998_v26, %v997_v27  ;;  %v1932_v30 = vpop.f32.mrb[60].mxu0  ;;  %v1210_v17 = vld [vmem:[%s2981_s3 + $0xa8] sm:$0xff] (!%p1627_p1)  ;;  %v1225_v26 = vld [vmem:[%s2981_s3 + $0x120] sm:$0xff] (!%p1627_p1)  ;;  %v2010_v27 = vpack.c.bf16 (!%p1627_p1), %v1194_v22, %v1193_v21  ;;  %v1252_v21 = vld [vmem:[%s2981_s3 + $0x1f8] sm:$0xff] (!%p1627_p1)  ;;  %v2026_v22 = vpack.c.bf16 (!%p1627_p1), %v1202_v11, %v1201_v7 }
 0x179   : > { %v1000_v31 = vmax.f32 %v1932_v30, 0.0  ;;  %v920_v34 = vpop.f32.mrb[61].mxu0  ;;  %v2008_v20 = vpack.c.bf16 (!%p1627_p1), %v1210_v17, %v1209_v13  ;;  %v1211_v30 = vld [vmem:[%s2981_s3 + $0xb0] sm:$0xff] (!%p1627_p1)  ;;  %v1220_v17 = vld [vmem:[%s2981_s3 + $0xf8] sm:$0xff] (!%p1627_p1) }
 0x17a   : > { %v999_v35 = vmax.f32 %v920_v34, 0.0  ;;  %v1195_v34 = vld [vmem:[%s2981_s3 + $0x30] sm:$0xff] (!%p1627_p1) }
 0x17b   : > { %v1219_v13 = vld [vmem:[%s2981_s3 + $0xf0] sm:$0xff] (!%p1627_p1) }
 0x17c   : > { %v1992_v32 = vpack.c.bf16 %v1000_v31, %v999_v35  ;;  %v1935_v36 = vpop.f32.mrb[62].mxu0  ;;  %v1212_v31 = vld [vmem:[%s2981_s3 + $0xb8] sm:$0xff] (!%p1627_p1)  ;;  %v2042_v35 = vpack.c.bf16 (!%p1627_p1), %v1226_v18, %v1225_v26  ;;  %v2058_v26 = vpack.c.bf16 (!%p1627_p1), %v1234_v16, %v1233_v12  ;;  %v2028_v18 = vpack.c.bf16 (!%p1627_p1), %v1220_v17, %v1219_v13 }
 0x17d   : > { %v1002_v37 = vmax.f32 %v1935_v36, 0.0  ;;  %v930_v39 = vpop.f32.mrb[63].mxu0  ;;  %v1196_v36 = vld [vmem:[%s2981_s3 + $0x38] sm:$0xff] (!%p1627_p1) }
 0x17e   : > { %v1001_v40 = vmax.f32 %v930_v39, 0.0  ;;  %v1244_v39 = vld [vmem:[%s2981_s3 + $0x1b8] sm:$0xff] (!%p1627_p1)  ;;  %v2014_v46 = vpack.c.bf16 (!%p1627_p1), %v1196_v36, %v1195_v34  ;;  %v1257_v34 = vsub.s32 (!%p1627_p1), 0, %v2685_v49 }
 0x17f   : > { %1983 = vmatpush3.bf16.xpose.msra.mxu1 %v2670_v44  ;;  %v1155_v44 = vunpack.c.0.s8 %v1154_v28  ;;  %v1245_v28 = vld [vmem:[%s2981_s3 + $0x1c0] sm:$0xff] (!%p1627_p1) }
 0x180   : > { %1985 = vmatprep.subr.bf16.mxu1 %v1984_v24  ;;  %v1996_v41 = vpack.c.bf16 %v1002_v37, %v1001_v40  ;;  %v1241_v24 = vld [vmem:[%s2981_s3 + $0x1a0] sm:$0xff] (!%p1627_p1)  ;;  %v1243_v37 = vld [vmem:[%s2981_s3 + $0x1b0] sm:$0xff] (!%p1627_p1) }
 0x181   : > { %v2044_v40 = vpack.c.bf16 (!%p1627_p1), %v1244_v39, %v1243_v37 }
 0x187   : > { %1987 = vmatpush3.bf16.xpose.msra.mxu1 %v2672_v48  ;;  %v1158_v48 = vsub.s32 %v1155_v44, %v2685_v49 }
 0x188   : > { %1989 = vmatprep.subr.bf16.mxu1 %v1988_v29  ;;  %v2040_v29 = vpack.c.bf16 (!%p1627_p1), %v1242_v25, %v1241_v24 }
 0x18f   : > { %1991 = vmatpush3.bf16.xpose.msra.mxu1 %v2675_v53 }
 0x190   : > { %1993 = vmatprep.subr.bf16.mxu1 %v1992_v32  ;;  %v2012_v32 = vpack.c.bf16 (!%p1627_p1), %v1212_v31, %v1211_v30  ;;  %v1236_v31 = vld [vmem:[%s2981_s3 + $0x178] sm:$0xff] (!%p1627_p1) }
 0x197   : > { %1995 = vmatpush3.bf16.xpose.msra.mxu1 %v1994_v57 }
 0x198   : > { %1997 = vmatprep.subr.bf16.mxu1 %v1996_v41  ;;  %v1227_v41 = vld [vmem:[%s2981_s3 + $0x130] sm:$0xff] (!%p1627_p1) }
 0x19f   : > { %1999 = vmatpush3.bf16.xpose.msra.mxu1 %v1998_v62  ;;  %v1190_v62 = vld [vmem:[%s2981_s3 + $0x8] sm:$0xff] (!%p1627_p1) }
 0x1a0   : > { %v2002_v1 = vpack.c.bf16 (!%p1627_p1), %v1190_v62, %v1189_v60  ;;  %2033 = vmatprep.subr.bf16.mxu1 (!%p1627_p1), %v2032_v2  ;;  %v1200_v62 = vld [vmem:[%s2981_s3 + $0x58] sm:$0xff] (!%p1627_p1)  ;;  %v1217_v2 = vld [vmem:[%s2981_s3 + $0xe0] sm:$0xff] (!%p1627_p1) }
 0x1a2   : > { %2003 = vmatpush3.bf16.msra.mxu0 (!%p1627_p1), %v2002_v1  ;;  %v1232_v1 = vld [vmem:[%s2981_s3 + $0x158] sm:$0xff] (!%p1627_p1) }
 0x1a3   : > { %2005 = vmatprep.subr.bf16.mxu0 (!%p1627_p1), %v2004_v10  ;;  %v2054_v10 = vpack.c.bf16 (!%p1627_p1), %v1232_v1, %v1231_v63 }
 0x1a6   : > { %1767 = vmatmul.mubr.f32.vlgmr.msra.gmra.mrb[2].mxu1 %v2652_v3  ;;  %2007 = vmatpush3.bf16.msra.mxu0 (!%p1627_p1), %v2006_v43  ;;  %v2024_v43 = vpack.c.bf16 (!%p1627_p1), %v1218_v38, %v1217_v2  ;;  %v1235_v3 = vld [vmem:[%s2981_s3 + $0x170] sm:$0xff] (!%p1627_p1) }
 0x1a7   : > { %2035 = vmatpush3.bf16.msra.mxu1 (!%p1627_p1), %v2034_v6  ;;  %2009 = vmatprep.subr.bf16.mxu0 (!%p1627_p1), %v2008_v20  ;;  %v2022_v6 = vpack.c.bf16 (!%p1627_p1), %v1200_v62, %v1199_v61  ;;  %v1251_v20 = vld [vmem:[%s2981_s3 + $0x1f0] sm:$0xff] (!%p1627_p1)  ;;  %v2062_v36 = vpack.c.bf16 (!%p1627_p1), %v1236_v31, %v1235_v3 }
 0x1a8   : > { %2037 = vmatprep.subr.bf16.mxu1 (!%p1627_p1), %v2036_v15  ;;  %v2056_v15 = vpack.c.bf16 (!%p1627_p1), %v1250_v5, %v1249_v4  ;;  %v2060_v30 = vpack.c.bf16 (!%p1627_p1), %v1252_v21, %v1251_v20 }
 0x1aa   : > { %2011 = vmatpush3.bf16.msra.mxu0 (!%p1627_p1), %v2010_v27  ;;  %v1203_v27 = vld [vmem:[%s2981_s3 + $0x70] sm:$0xff] (!%p1627_p1) }
 0x1ab   : > { %2039 = vmatpush3.bf16.msra.mxu1 (!%p1627_p1), %v2038_v19  ;;  %2013 = vmatprep.subr.bf16.mxu0 (!%p1627_p1), %v2012_v32  ;;  %v1265_v32 = vsub.s32 (!%p1627_p1), 2, %v2685_v49 }
 0x1ac   : > { %2041 = vmatprep.subr.bf16.mxu1 (!%p1627_p1), %v2040_v29  ;;  %v1204_v29 = vld [vmem:[%s2981_s3 + $0x78] sm:$0xff] (!%p1627_p1) }
 0x1ae   : > { %2015 = vmatpush3.bf16.msra.mxu0 (!%p1627_p1), %v2014_v46 }
 0x1af   : > { %2043 = vmatpush3.bf16.msra.mxu1 (!%p1627_p1), %v2042_v35  ;;  %v2030_v35 = vpack.c.bf16 (!%p1627_p1), %v1204_v29, %v1203_v27 }
 0x1b0   : > { %2045 = vmatprep.subr.bf16.mxu1 (!%p1627_p1), %v2044_v40 }
 0x239   : > { %v1071_v23 = vpop.f32.mrb[0].mxu1 }
 0x23a   : > { %v1073_v42 = vpop.f32.mrb[1].mxu1 }
 0x23b   : > { %v1151_v45 = vcombine.low %v1071_v23, %v1073_v42  ;;  %v1228_v23 = vld [vmem:[%s2981_s3 + $0x138] sm:$0xff] (!%p1627_p1)  ;;  %v1213_v42 = vld [vmem:[%s2981_s3 + $0xc0] sm:$0xff] (!%p1627_p1) }
 0x23c   : > { %v2046_v44 = vpack.c.bf16 (!%p1627_p1), %v1228_v23, %v1227_v41  ;;  %v1253_v41 = vld [vmem:[%s2982_s4] sm:$0x1] (!%p1627_p1) }
 0x23d   : > { %v1159_v53 = vrot.slane %v1151_v45, %v1158_v48  ;;  %v1214_v45 = vld [vmem:[%s2981_s3 + $0xc8] sm:$0xff] (!%p1627_p1) }
 0x23e   : > { %2047 = vmatpush3.bf16.msra.mxu1 (!%p1627_p1), %v2046_v44 }
 0x279   : > { %v1142_v50 = vpop.f32.mrb[2].mxu1 }
 0x27a   : > { %v1144_v51 = vpop.f32.mrb[3].mxu1 }
 0x27b   : > { %v1152_v52 = vcombine.low %v1142_v50, %v1144_v51  ;;  %v1197_v50 = vld [vmem:[%s2981_s3 + $0x40] sm:$0xff] (!%p1627_p1)  ;;  %v1198_v51 = vld [vmem:[%s2981_s3 + $0x48] sm:$0xff] (!%p1627_p1) }
 0x27c   : > { %v2018_v58 = vpack.c.bf16 (!%p1627_p1), %v1198_v51, %v1197_v50 }
 0x27d   : > { %v1166_v54 = vrot.slane %v1152_v52, %v1158_v48  ;;  %v1229_v52 = vld [vmem:[%s2981_s3 + $0x140] sm:$0xff] (!%p1627_p1) }
 0x27f   : > { %v1167_v33 = vcombine.low %v1159_v53, %v1166_v54  ;;  %1185 = sbr.rel (%p1627_p1) target bundleno = 879 (0x36f), region = 48  ;;  %v2048_v53 = vpack.c.bf16 (!%p1627_p1), %v1246_v47, %v1245_v28  ;;  %v1230_v54 = vld [vmem:[%s2981_s3 + $0x148] sm:$0xff] (!%p1627_p1) }
 0x280   : > { %v2050_v59 = vpack.c.bf16 (!%p1627_p1), %v1230_v54, %v1229_v52 }
 0x281   : > { %v1174_v56 = vrot.slane %v1167_v33, %v1158_v48  ;;  %v2016_v48 = vpack.c.bf16 (!%p1627_p1), %v1214_v45, %v1213_v42  ;;  %v1215_v33 = vld [vmem:[%s2981_s3 + $0xd0] sm:$0xff] (!%p1627_p1)  ;;  %2049 = vmatprep.subr.bf16.mxu1 (!%p1627_p1), %v2048_v53 }
 0x282   : > { %2051 = vmatpush3.bf16.msra.mxu1 (!%p1627_p1), %v2050_v59 }
 0x283   : > { %v1176_v57 = vadd.f32 %v1174_v56, %v1003_v55  ;;  %v1216_v55 = vld [vmem:[%s2981_s3 + $0xd8] sm:$0xff] (!%p1627_p1)  ;;  %v1247_v56 = vld [vmem:[%s2981_s3 + $0x1d0] sm:$0xff] (!%p1627_p1)  ;;  %2017 = vmatprep.subr.bf16.mxu0 (!%p1627_p1), %v2016_v48 }
 0x284   : > { %v2020_v60 = vpack.c.bf16 (!%p1627_p1), %v1216_v55, %v1215_v33  ;;  %2019 = vmatpush3.bf16.msra.mxu0 (!%p1627_p1), %v2018_v58 }
 0x285   : > { %1181 = vst.msk [vmem:[#allocation2] sm:$0xf] %vm2688_vm3, %v1176_v57  ;;  %v1248_v57 = vld [vmem:[%s2981_s3 + $0x1d8] sm:$0xff] (!%p1627_p1) }
 0x286   : > { %v2052_v0 = vpack.c.bf16 %v1248_v57, %v1247_v56  ;;  %2021 = vmatprep.subr.bf16.mxu0 %v2020_v60 }
 0x288   : > { %2053 = vmatprep.subr.bf16.mxu1 %v2052_v0  ;;  %2023 = vmatpush3.bf16.msra.mxu0 %v2022_v6 }
 0x289   : > { %2055 = vmatpush3.bf16.msra.mxu1 %v2054_v10  ;;  %2025 = vmatprep.subr.bf16.mxu0 %v2024_v43 }
 0x28a   : > { %2057 = vmatprep.subr.bf16.mxu1 %v2056_v15 }
 0x28c   : > { %v1186_v14 = vld [vmem:[#allocation2] sm:$0xf]  ;;  %2027 = vmatpush3.bf16.msra.mxu0 %v2026_v22 }
 0x28d   : > { %v1187_v19 = vmul.f32 0.00390625, %v1186_v14  ;;  %2059 = vmatpush3.bf16.msra.mxu1 %v2058_v26  ;;  %2029 = vmatprep.subr.bf16.mxu0 %v2028_v18 }
 0x28e   : > { %2061 = vmatprep.subr.bf16.mxu1 %v2060_v30 }
 0x28f   : > { %1188 = vst.msk [vmem:[%s2390_s8] sm:$0xf] %vm2688_vm3, %v1187_v19  ;;  %v1262_v24 = vrot.slane %v1187_v19, %v1261_v8  ;;  %v1270_v25 = vrot.slane %v1187_v19, %v1269_v9  ;;  %v1258_v37 = vrot.slane %v1187_v19, %v1257_v34  ;;  %v1266_v39 = vrot.slane %v1187_v19, %v1265_v32 }
 0x290   : > { %2031 = vmatpush3.bf16.msra.mxu0 %v2030_v35 }
 0x291   : > { %1339 = vmatprep.mubr.f32.mxu0 %v1262_v24  ;;  %1409 = vmatprep.mubr.f32.mxu1 %v1270_v25 }
 0x292   : > { %2063 = vmatpush3.bf16.msra.mxu1 %v2062_v36 }
 0x293   : > { %1340 = vmatmul.mubr.f32.vlgmr.msra.gmra.mrb[0].mxu0 %v1258_v37 }
 0x295   : > { %1410 = vmatmul.mubr.f32.vlgmr.msra.gmra.mrb[0].mxu1 %v1266_v39 }
 0x366   : > { %v1800_v40 = vpop.f32.mrb[0].mxu0 }
 0x367   : > { %v1801_v23 = vpop.f32.mrb[1].mxu0 }
 0x368   : > { %v1835_v42 = vpop.f32.mrb[0].mxu1  ;;  %v1802_v45 = vadd.f32 %v1801_v23, %v1800_v40 }
 0x369   : > { %v1836_v49 = vpop.f32.mrb[1].mxu1 }
 0x36a   : > { %v1837_v46 = vadd.f32 %v1836_v49, %v1835_v42  ;;  %v1342_v28 = vadd.f32 %v1802_v45, %v1253_v41 }
 0x36c   : > { %v1412_v47 = vadd.f32 %v1837_v46, %v1342_v28 }
 0x36e   : > { %1416 = vst.msk [vmem:[%s2995_s12] sm:$0x1] %vm1415_vm4, %v1412_v47 }
 0x36f PF: > { %s1629_s24 = sshll.u32 %s2256_s25, 4  ;;  %s2996_s30 = scalar_lea.vmem [#allocation3], %s2379_s14 }
 0x370   : > { %s2903_s29 = scalar_lea.hbm %s2983_s5, %s1629_s24  ;;  %s1435_s11 = sshll.u32 %s2996_s30, 4  ;;  %s1436_s11 = int_to_ptr.vmem [resolvable:$true] %s1435_s11 }
 0x371   : > { %s1418_s16 = scalar_lea.sflag [#allocation4], %s2379_s14  ;;  %s2142_s17 = scalar_lea.vmem %s1436_s11, 16 }
 0x372   : > { %p2143_p2 = scmp.ne.s32.totalorder %s1436_s11, %s2142_s17  ;;  %s2272_s18 = smov [#allocation3]  }
 0x373   : > { %s2146_s19 = sshll.u32 %s2272_s18, 4  ;;  %s2147_s19 = int_to_ptr.vmem [resolvable:$false] %s2146_s19 }
 0x374   : > { %p2144_p4 = pnand %p2143_p2, %p2358_p3  ;;  %s2148_s12 = scalar_lea.vmem %s2147_s19, 32 }
 0x375   : > { %p2149_p6 = scmp.lt.s32.totalorder %s1436_s11, %s2147_s19  ;;  %p2150_p7 = scmp.lt.s32.totalorder %s2148_s12, %s2142_s17 }
 0x376   : > { %p2145_p5 = pneg %p2144_p4 }
 0x377   : > { %p2151_p8 = por %p2150_p7, %p2149_p6 }
 0x379   : > { %p2152_p10 = pnand %p2151_p8, %p2145_p5 }
 0x37b   : > { %2155 = shalt.err (!%p2152_p10)
}
 0x37c   : > { %s2156_s24 = scalar_lea.hbm %s2903_s29, 16  ;;  %s2160_s30 = scalar_lea.hbm %s2983_s5, 32 }
 0x37d   : > { %p2157_p11 = scmp.ne.s32.totalorder %s2903_s29, %s2156_s24  ;;  %p2161_p0 = scmp.lt.u32.totalorder %s2903_s29, %s2983_s5 }
 0x37e   : > { %p2162_p1 = scmp.lt.u32.totalorder %s2160_s30, %s2156_s24  ;;  %p2164_p4 = scmp.lt.u32.totalorder %s2156_s24, %s2903_s29 }
 0x37f   : > { %p2158_p12 = pnand %p2157_p11, %p2358_p3 }
 0x380   : > { %p2163_p2 = por %p2162_p1, %p2161_p0 }
 0x381   : > { %p2159_p13 = pneg %p2158_p12 }
 0x382   : > { %p2165_p5 = por %p2164_p4, %p2163_p2 }
 0x384   : > { %p2166_p6 = pnand %p2165_p5, %p2159_p13 }
 0x386   : > { %2169 = shalt.err (!%p2166_p6)
}
 0x387   : > { %2064 = dma.vmem_to_hbm [thread:$0]  (%p2358_p3), %s1436_s11, 16, %s2903_s29, %s1418_s16  }
 0x388   : > { %s1634_s17 = sshll.u32 %s2256_s25, 6  ;;  %s1449_s12 = sshll.u32 %s2390_s8, 4  ;;  %s1450_s12 = int_to_ptr.vmem [resolvable:$true] %s1449_s12 }
 0x389   : > { %s2930_s18 = scalar_lea.hbm %s2984_s6, %s1634_s17  ;;  %s1422_s24 = scalar_lea.sflag [#allocation6], %s2379_s14 }
 0x38a   : > { %s2170_s30 = scalar_lea.vmem %s1450_s12, 64  ;;  %s2273_s19 = smov [#allocation5]  }
 0x38b   : > { %p2171_p7 = scmp.ne.s32.totalorder %s1450_s12, %s2170_s30  ;;  %s2174_s0 = sshll.u32 %s2273_s19, 4  ;;  %s2175_s0 = int_to_ptr.vmem [resolvable:$false] %s2174_s0 }
 0x38c   : > { %s2176_s1 = scalar_lea.vmem %s2175_s0, 128  ;;  %p2177_p11 = scmp.lt.s32.totalorder %s1450_s12, %s2175_s0 }
 0x38d   : > { %p2172_p8 = pnand %p2171_p7, %p2358_p3  ;;  %p2178_p12 = scmp.lt.s32.totalorder %s2176_s1, %s2170_s30 }
 0x38f   : > { %p2173_p10 = pneg %p2172_p8  ;;  %p2179_p13 = por %p2178_p12, %p2177_p11 }
 0x391   : > { %p2180_p0 = pnand %p2179_p13, %p2173_p10 }
 0x393   : > { %2183 = shalt.err (!%p2180_p0)
}
 0x394   : > { %s2184_s25 = scalar_lea.hbm %s2930_s18, 64  ;;  %s2188_s29 = scalar_lea.hbm %s2984_s6, 128 }
 0x395   : > { %p2185_p1 = scmp.ne.s32.totalorder %s2930_s18, %s2184_s25  ;;  %p2189_p5 = scmp.lt.u32.totalorder %s2930_s18, %s2984_s6 }
 0x396   : > { %p2190_p6 = scmp.lt.u32.totalorder %s2188_s29, %s2184_s25  ;;  %p2192_p8 = scmp.lt.u32.totalorder %s2184_s25, %s2930_s18 }
 0x397   : > { %p2186_p2 = pnand %p2185_p1, %p2358_p3 }
 0x398   : > { %p2191_p7 = por %p2190_p6, %p2189_p5 }
 0x399   : > { %p2187_p4 = pneg %p2186_p2 }
 0x39a   : > { %p2193_p10 = por %p2192_p8, %p2191_p7 }
 0x39c   : > { %p2194_p11 = pnand %p2193_p10, %p2187_p4 }
 0x39e   : > { %2197 = shalt.err (!%p2194_p11)
}
 0x39f   : > { %2065 = dma.vmem_to_hbm [thread:$0]  (%p2358_p3), %s1450_s12, 64, %s2930_s18, %s1422_s24  }
 0x3a0 PF: > { %p2075_p12 = scmp.ge.s32.totalorder %s2268_s28, 2  ;;  %s1461_s1 = sand.u32 1, %s2240_s21  }
 0x3a1   : > { %s1462_s16 = scalar_lea.sflag [#allocation4], %s1461_s1 }
 0x3a2   : > { %p2069_p13 = pnand %p2075_p12, %p2368_p9 }
 0x3a4   : > { %2231 = dma.done.wait (!%p2069_p13), %s1462_s16, 16  }
 0x3a5   : > { %2233 = vsyncadd (!%p2069_p13), %s1462_s16, 4294967280  ;;  %s1470_s17 = scalar_lea.sflag [#allocation6], %s1461_s1 }
 0x3a6   : > { %2235 = dma.done.wait (!%p2069_p13), %s1470_s17, 64  }
 0x3a7   : > { %2237 = vsyncadd (!%p2069_p13), %s1470_s17, 4294967232  ;;  %s23_s28 = sadd.s32 1, %s2268_s28   ;;  %s2997_s9 = sld [smem:[#allocation9_spill]] }
 0x3a8   : > { %p20_p0 = scmp.ge.s32.totalorder %s23_s28, 6   ;;  %s2998_s21 = smov %s2244_s22 }
 0x3a9   : > { %s2999_s22 = smov %s2248_s23  ;;  %s3000_s23 = smov %s2376_s13 }
 0x3aa   : > { %s3001_s24 = smov %s2260_s26  ;;  %s3002_s25 = smov %s2264_s27 }
 0x3ab   : > { %s3003_s26 = smov %s3006_s7  ;;  %22 = sbr.rel (!%p20_p0) target bundleno = 10 (0xa), region = 100 }
 0x3ad   : > { %s3004_s27 = smov %s2997_s9 }
 0x3b2   :  { %1475 = vsyncpa [#allocation4], 1 }
 0x3b3   :  { %1477 = vsyncpa [#allocation4 + $0x1], 1 }
 0x3b4   :  { %1478 = vsyncpa [#allocation6], 1 }
 0x3b5   :  { %1480 = vsyncpa [#allocation6 + $0x1], 1 }

</bundles_post_ra>
